<compile_context>
chip_gen: v7x
topology: tpu7x:2x2x1
jax: 0.10.0
libtpu: 0.0.40
codegen_flags: <defaults>
</compile_context>

<pallas_src>
import functools

import jax
import jax.numpy as jnp
from jax.experimental import pallas as pl
from jax.experimental.pallas import tpu as pltpu


# ----------------------------------------------------------------------------
# Recurrent LSTM kernel: only h_prev @ W_hh^T + gate math per time step.
# ----------------------------------------------------------------------------
def _lstm_recurrence_kernel(gx_ref, whh_ref, h0_ref, c0_ref,
                            out_ref, hn_ref, cn_ref,
                            h_scr, c_scr, *, hidden_size, t_chunk):
    """Grid = (batch_blocks [parallel], time_chunks [arbitrary/sequential])."""
    step = pl.program_id(1)
    H = hidden_size

    @pl.when(step == 0)
    def _init():
        h_scr[...] = h0_ref[...]
        c_scr[...] = c0_ref[...]

    whh = whh_ref[...]                  # (H, 4H) — hoisted out of the time loop

    def body(tc, carry):
        h_prev, c_prev = carry
        # gx already holds x_t @ W_ih^T + b_ih + b_hh (precomputed outside).
        gates = gx_ref[tc] + jnp.dot(h_prev, whh,
                                     preferred_element_type=jnp.float32)
        # PyTorch gate order (i, f, g, o).  For large H keep H a multiple of
        # 128 so these slices are lane-aligned (test shapes use full blocks).
        i_g = jax.nn.sigmoid(gates[:, 0 * H:1 * H])
        f_g = jax.nn.sigmoid(gates[:, 1 * H:2 * H])
        g_g = jnp.tanh(gates[:, 2 * H:3 * H])
        o_g = jax.nn.sigmoid(gates[:, 3 * H:4 * H])
        c_new = f_g * c_prev + i_g * g_g
        h_new = o_g * jnp.tanh(c_new)
        out_ref[tc] = h_new.astype(out_ref.dtype)
        return h_new, c_new

    h_fin, c_fin = jax.lax.fori_loop(
        0, t_chunk, body, (h_scr[...], c_scr[...]), unroll=True)
    h_scr[...] = h_fin
    c_scr[...] = c_fin

    # Final states written exactly once — no redundant full-tile stores.
    @pl.when(step == pl.num_programs(1) - 1)
    def _finalize():
        hn_ref[...] = h_fin.astype(hn_ref.dtype)
        cn_ref[...] = c_fin.astype(cn_ref.dtype)


def _largest_divisor(n, cap, multiple_of=1):
    for t in range(min(n, cap), 0, -1):
        if n % t == 0 and (t % multiple_of == 0 or t == n):
            return t
    return n


def lstm_recurrence_pallas(gx_tm, w_hh_t, h0, c0, *, t_chunk=None):
    """gx_tm: [S, B, 4H] time-major precomputed (x @ W_ih^T + b_ih + b_hh).
    w_hh_t: [H, 4H].  Returns (out [S, B, H], h_n [B, H], c_n [B, H])."""
    S, B, H4 = gx_tm.shape
    H = w_hh_t.shape[0]
    assert H4 == 4 * H

    if t_chunk is None:
        t_chunk = _largest_divisor(S, 16)          # amortize grid-step overhead

    # Optional batch blocking: gives the second TensorCore (v7x) independent
    # slices of the recurrence when B is large; no-op at small B.
    if B >= 16 and B % 16 == 0:
        b_blk = B // 2
    else:
        b_blk = B
    n_b = B // b_blk

    kernel = functools.partial(_lstm_recurrence_kernel,
                               hidden_size=H, t_chunk=t_chunk)

    grid_spec = pltpu.PrefetchScalarGridSpec(
        num_scalar_prefetch=0,
        grid=(n_b, S // t_chunk),
        in_specs=[
            pl.BlockSpec((t_chunk, b_blk, 4 * H), lambda b, s: (s, b, 0)),  # gx
            pl.BlockSpec((H, 4 * H), lambda b, s: (0, 0)),                  # W_hh^T
            pl.BlockSpec((b_blk, H), lambda b, s: (b, 0)),                  # h0
            pl.BlockSpec((b_blk, H), lambda b, s: (b, 0)),                  # c0
        ],
        out_specs=[
            pl.BlockSpec((t_chunk, b_blk, H), lambda b, s: (s, b, 0)),      # outputs
            pl.BlockSpec((b_blk, H), lambda b, s: (b, 0)),                  # h_n
            pl.BlockSpec((b_blk, H), lambda b, s: (b, 0)),                  # c_n
        ],
        scratch_shapes=[
            pltpu.VMEM((b_blk, H), jnp.float32),   # h carry
            pltpu.VMEM((b_blk, H), jnp.float32),   # c carry
        ],
    )

    out_shapes = (
        jax.ShapeDtypeStruct((S, B, H), jnp.float32),
        jax.ShapeDtypeStruct((B, H), jnp.float32),
        jax.ShapeDtypeStruct((B, H), jnp.float32),
    )

    return pl.pallas_call(
        kernel,
        out_shape=out_shapes,
        grid_spec=grid_spec,
        compiler_params=pltpu.CompilerParams(
            dimension_semantics=("parallel", "arbitrary"),
            vmem_limit_bytes=64 * 1024 * 1024),
    )(gx_tm, w_hh_t, h0, c0)


# ----------------------------------------------------------------------------
# vocab_linear + softmax kernel (fully parallel, row-tiled).
# ----------------------------------------------------------------------------
def _vocab_softmax_kernel(h_ref, wv_ref, bv_ref, out_ref):
    logits = (jnp.dot(h_ref[...], wv_ref[...],
                      preferred_element_type=jnp.float32) + bv_ref[...])
    m = jnp.max(logits, axis=-1, keepdims=True)
    e = jnp.exp(logits - m)
    out_ref[...] = (e / jnp.sum(e, axis=-1, keepdims=True)).astype(out_ref.dtype)


def vocab_softmax_pallas(h_flat, w_v_t, b_v):
    """h_flat: [N, H], w_v_t: [H, V], b_v: [V] -> softmax(h @ Wv^T + b) [N, V]."""
    N, H = h_flat.shape
    V = w_v_t.shape[1]
    tm = _largest_divisor(N, 512, multiple_of=8)
    b2 = b_v.reshape(1, V)

    return pl.pallas_call(
        _vocab_softmax_kernel,
        out_shape=jax.ShapeDtypeStruct((N, V), jnp.float32),
        grid_spec=pltpu.PrefetchScalarGridSpec(
            num_scalar_prefetch=0,
            grid=(N // tm,),
            in_specs=[
                pl.BlockSpec((tm, H), lambda i: (i, 0)),
                pl.BlockSpec((H, V), lambda i: (0, 0)),
                pl.BlockSpec((1, V), lambda i: (0, 0)),
            ],
            out_specs=pl.BlockSpec((tm, V), lambda i: (i, 0)),
        ),
        compiler_params=pltpu.CompilerParams(
            dimension_semantics=("parallel",),
            vmem_limit_bytes=64 * 1024 * 1024),
    )(h_flat, w_v_t, b2)


# ----------------------------------------------------------------------------
# Full PointerRNNDecoder forward (is_attention=False path, rnn_type='lstm').
# ----------------------------------------------------------------------------
def pointer_rnn_decoder_forward(input_embeddings, lstm_params, vocab_w, vocab_b,
                                hidden_size, num_layers,
                                decoder_hidden_states=None, kwargs=None):
    """input_embeddings: [B, S, E] (batch_first, matching the PyTorch module).
    Returns (vocab_dists [B, S, V], (h_n [L, B, H], c_n [L, B, H]), kwargs)."""
    B, S, _ = input_embeddings.shape
    H = hidden_size

    # Transpose only once at the start; everything stays time-major across layers.
    x_tm = jnp.transpose(input_embeddings, (1, 0, 2))        # [S, B, E]

    if decoder_hidden_states is None:
        h0s = [jnp.zeros((B, H), jnp.float32) for _ in range(num_layers)]
        c0s = [jnp.zeros((B, H), jnp.float32) for _ in range(num_layers)]
    else:
        h0_all, c0_all = decoder_hidden_states
        h0s = [h0_all[l] for l in range(num_layers)]
        c0s = [c0_all[l] for l in range(num_layers)]

    layer_in = x_tm
    h_finals, c_finals = [], []
    for l in range(num_layers):
        w_ih, w_hh, b_ih, b_hh = lstm_params[l]
        in_sz = layer_in.shape[-1]
        # Hoisted input projection: one big [S*B, in] x [in, 4H] matmul instead
        # of S tiny MXU-starved matmuls inside the sequential recurrence.
        gx = layer_in.reshape(S * B, in_sz) @ w_ih.T + (b_ih + b_hh)
        gx = gx.reshape(S, B, 4 * H)
        out_tm, h_n, c_n = lstm_recurrence_pallas(gx, w_hh.T, h0s[l], c0s[l])
        h_finals.append(h_n)
        c_finals.append(c_n)
        layer_in = out_tm   # dropout_ratio = 0.0 -> no inter-layer dropout

    # vocab_linear + softmax on the time-major outputs (no extra transpose).
    V = vocab_w.shape[0]
    dists_flat = vocab_softmax_pallas(layer_in.reshape(S * B, H),
                                      vocab_w.T, vocab_b)
    vocab_dists = jnp.transpose(dists_flat.reshape(S, B, V), (1, 0, 2))

    hidden = (jnp.stack(h_finals, 0), jnp.stack(c_finals, 0))
    # TODO(synk): is_attention / is_pgen / is_coverage branch (LuongAttention,
    # x_context, p_gen scatter_add pointer mixing) is not implemented here.
    return vocab_dists, hidden, kwargs


# ----------------------------------------------------------------------------
# Pure-JAX reference mirroring torch.nn.LSTM + Linear + softmax semantics.
# ----------------------------------------------------------------------------
def _reference_forward(input_embeddings, lstm_params, vocab_w, vocab_b,
                       hidden_size, num_layers):
    B, S, _ = input_embeddings.shape
    H = hidden_size
    x = jnp.transpose(input_embeddings, (1, 0, 2))
    h_fin, c_fin = [], []
    for l in range(num_layers):
        w_ih, w_hh, b_ih, b_hh = lstm_params[l]

        def step(carry, x_t, w_ih=w_ih, w_hh=w_hh, b_ih=b_ih, b_hh=b_hh):
            h, c = carry
            g = x_t @ w_ih.T + h @ w_hh.T + b_ih + b_hh
            i = jax.nn.sigmoid(g[:, 0 * H:1 * H])
            f = jax.nn.sigmoid(g[:, 1 * H:2 * H])
            gg = jnp.tanh(g[:, 2 * H:3 * H])
            o = jax.nn.sigmoid(g[:, 3 * H:4 * H])
            c = f * c + i * gg
            h = o * jnp.tanh(c)
            return (h, c), h

        init = (jnp.zeros((B, H), jnp.float32), jnp.zeros((B, H), jnp.float32))
        (h_n, c_n), out = jax.lax.scan(step, init, x)
        h_fin.append(h_n)
        c_fin.append(c_n)
        x = out
    dec_out = jnp.transpose(x, (1, 0, 2))
    logits = dec_out @ vocab_w.T + vocab_b
    dists = jax.nn.softmax(logits, axis=-1)
    return dists, (jnp.stack(h_fin, 0), jnp.stack(c_fin, 0))


def make_params(key, vocab_size, embedding_size, hidden_size, num_layers):
    """Deterministic params, PyTorch-style U(-1/sqrt(H), 1/sqrt(H)) init."""
    k = 1.0 / jnp.sqrt(jnp.float32(hidden_size))
    lstm_params = []
    for l in range(num_layers):
        in_sz = embedding_size if l == 0 else hidden_size
        key, k1, k2, k3, k4 = jax.random.split(key, 5)
        w_ih = jax.random.uniform(k1, (4 * hidden_size, in_sz), jnp.float32, -k, k)
        w_hh = jax.random.uniform(k2, (4 * hidden_size, hidden_size), jnp.float32, -k, k)
        b_ih = jax.random.uniform(k3, (4 * hidden_size,), jnp.float32, -k, k)
        b_hh = jax.random.uniform(k4, (4 * hidden_size,), jnp.float32, -k, k)
        lstm_params.append((w_ih, w_hh, b_ih, b_hh))
    key, kv1, kv2 = jax.random.split(key, 3)
    vocab_w = jax.random.uniform(kv1, (vocab_size, hidden_size), jnp.float32, -k, k)
    vocab_b = jax.random.uniform(kv2, (vocab_size,), jnp.float32, -k, k)
    return lstm_params, vocab_w, vocab_b


if __name__ == "__main__":
    B, S, E, H, L, V = 2, 8, 16, 32, 2, 50

    key = jax.random.PRNGKey(0)
    key, kx = jax.random.split(key)
    input_embeddings = jax.random.normal(kx, (B, S, E), jnp.float32)
    lstm_params, vocab_w, vocab_b = make_params(key, V, E, H, L)

    vocab_dists, (h_n, c_n), _ = pointer_rnn_decoder_forward(
        input_embeddings, lstm_params, vocab_w, vocab_b, H, L)
    vocab_dists = jax.block_until_ready(vocab_dists)
    h_n = jax.block_until_ready(h_n)
    c_n = jax.block_until_ready(c_n)

    ref_dists, (ref_h, ref_c) = _reference_forward(
        input_embeddings, lstm_params, vocab_w, vocab_b, H, L)

    assert vocab_dists.shape == (B, S, V)
    assert h_n.shape == (L, B, H) and c_n.shape == (L, B, H)
    assert jnp.allclose(vocab_dists, ref_dists, atol=1e-4, rtol=1e-4)
    assert jnp.allclose(h_n, ref_h, atol=1e-4, rtol=1e-4)
    assert jnp.allclose(c_n, ref_c, atol=1e-4, rtol=1e-4)
    assert jnp.allclose(vocab_dists.sum(-1), jnp.ones((B, S)), atol=1e-5)

    print("KERNEL_OK")
</pallas_src>

<mosaic_0001>
module attributes {stable_mosaic.version = 11 : i64} {
  func.func @_lstm_recurrence_kernel(%arg0: i32, %arg1: i32, %arg2: memref<8x2x128xf32, #tpu.memory_space<vmem>>, %arg3: memref<32x128xf32, #tpu.memory_space<vmem>>, %arg4: memref<2x32xf32, #tpu.memory_space<vmem>>, %arg5: memref<2x32xf32, #tpu.memory_space<vmem>>, %arg6: memref<8x2x32xf32, #tpu.memory_space<vmem>>, %arg7: memref<2x32xf32, #tpu.memory_space<vmem>>, %arg8: memref<2x32xf32, #tpu.memory_space<vmem>>, %arg9: memref<2x32xf32, #tpu.memory_space<vmem>>, %arg10: memref<2x32xf32, #tpu.memory_space<vmem>>) attributes {dimension_semantics = [#tpu.dimension_semantics<parallel>, #tpu.dimension_semantics<arbitrary>], iteration_bounds = array<i64: 1, 1>, scalar_prefetch = 0 : i64, scratch_operands = 2 : i64, tpu.core_type = #tpu.core_type<tc>, window_params = [{transform_indices = @transform_0, window_bounds = array<i64: 8, 2, 128>}, {pipeline_mode = #tpu.pipeline_mode<synchronous>, transform_indices = @transform_1, window_bounds = array<i64: 32, 128>}, {transform_indices = @transform_2, window_bounds = array<i64: 2, 32>}, {transform_indices = @transform_3, window_bounds = array<i64: 2, 32>}, {transform_indices = @transform_4, window_bounds = array<i64: 8, 2, 32>}, {transform_indices = @transform_5, window_bounds = array<i64: 2, 32>}, {transform_indices = @transform_6, window_bounds = array<i64: 2, 32>}]} {
    %c0_i32 = arith.constant 0 : i32
    %0 = arith.cmpi eq, %arg1, %c0_i32 : i32
    %1 = arith.extui %0 : i1 to i32
    %c0_i32_0 = arith.constant 0 : i32
    %2 = arith.cmpi ne, %1, %c0_i32_0 : i32
    scf.if %2 {
      %c0_76 = arith.constant 0 : index
      %c0_77 = arith.constant 0 : index
      %283 = vector.load %arg4[%c0_76, %c0_77] : memref<2x32xf32, #tpu.memory_space<vmem>>, vector<2x32xf32>
      %c0_78 = arith.constant 0 : index
      %c0_79 = arith.constant 0 : index
      %284 = vector.load %arg9[%c0_78, %c0_79] : memref<2x32xf32, #tpu.memory_space<vmem>>, vector<2x32xf32>
      tpu.vector_store %arg9[%c0_78, %c0_79], %283 {strides = array<i32>} : memref<2x32xf32, #tpu.memory_space<vmem>>, vector<2x32xf32>,
      %c0_80 = arith.constant 0 : index
      %c0_81 = arith.constant 0 : index
      %285 = vector.load %arg5[%c0_80, %c0_81] : memref<2x32xf32, #tpu.memory_space<vmem>>, vector<2x32xf32>
      %c0_82 = arith.constant 0 : index
      %c0_83 = arith.constant 0 : index
      %286 = vector.load %arg10[%c0_82, %c0_83] : memref<2x32xf32, #tpu.memory_space<vmem>>, vector<2x32xf32>
      tpu.vector_store %arg10[%c0_82, %c0_83], %285 {strides = array<i32>} : memref<2x32xf32, #tpu.memory_space<vmem>>, vector<2x32xf32>,
    } else {
    }
    %c0 = arith.constant 0 : index
    %c0_1 = arith.constant 0 : index
    %3 = vector.load %arg3[%c0, %c0_1] : memref<32x128xf32, #tpu.memory_space<vmem>>, vector<32x128xf32>
    %c0_2 = arith.constant 0 : index
    %c0_3 = arith.constant 0 : index
    %4 = vector.load %arg9[%c0_2, %c0_3] : memref<2x32xf32, #tpu.memory_space<vmem>>, vector<2x32xf32>
    %c0_4 = arith.constant 0 : index
    %c0_5 = arith.constant 0 : index
    %5 = vector.load %arg10[%c0_4, %c0_5] : memref<2x32xf32, #tpu.memory_space<vmem>>, vector<2x32xf32>
    %c0_i32_6 = arith.constant 0 : i32
    %6 = arith.index_cast %c0_i32_6 : i32 to index
    %c0_7 = arith.constant 0 : index
    %c0_8 = arith.constant 0 : index
    %7 = vector.load %arg2[%6, %c0_7, %c0_8] : memref<8x2x128xf32, #tpu.memory_space<vmem>>, vector<1x2x128xf32>
    %8 = vector.shape_cast %7 : vector<1x2x128xf32> to vector<2x128xf32>
    %cst = arith.constant dense<0.000000e+00> : vector<2x128xf32>
    %9 = tpu.matmul %4, %3, %cst {dimension_numbers = #tpu.dot_dimension_numbers<[1], [0], [0], [1], [0, 0, 1, 1], [], []>} : vector<2x32xf32>, vector<32x128xf32>, vector<2x128xf32> -> vector<2x128xf32>
    %10 = arith.addf %8, %9 : vector<2x128xf32>
    %11 = vector.extract_strided_slice %10 {offsets = [0, 0], sizes = [2, 32], strides = [1, 1]} : vector<2x128xf32> to vector<2x32xf32>
    %12 = arith.negf %11 : vector<2x32xf32>
    %13 = math.exp %12 : vector<2x32xf32>
    %cst_9 = arith.constant 1.000000e+00 : f32
    %14 = vector.broadcast %cst_9 : f32 to vector<2x32xf32>
    %15 = arith.addf %14, %13 : vector<2x32xf32>
    %16 = arith.divf %14, %15 : vector<2x32xf32>
    %17 = vector.extract_strided_slice %10 {offsets = [0, 32], sizes = [2, 32], strides = [1, 1]} : vector<2x128xf32> to vector<2x32xf32>
    %18 = arith.negf %17 : vector<2x32xf32>
    %19 = math.exp %18 : vector<2x32xf32>
    %cst_10 = arith.constant 1.000000e+00 : f32
    %20 = vector.broadcast %cst_10 : f32 to vector<2x32xf32>
    %21 = arith.addf %20, %19 : vector<2x32xf32>
    %22 = arith.divf %20, %21 : vector<2x32xf32>
    %23 = vector.extract_strided_slice %10 {offsets = [0, 64], sizes = [2, 32], strides = [1, 1]} : vector<2x128xf32> to vector<2x32xf32>
    %24 = math.tanh %23 : vector<2x32xf32>
    %25 = vector.extract_strided_slice %10 {offsets = [0, 96], sizes = [2, 32], strides = [1, 1]} : vector<2x128xf32> to vector<2x32xf32>
    %26 = arith.negf %25 : vector<2x32xf32>
    %27 = math.exp %26 : vector<2x32xf32>
    %cst_11 = arith.constant 1.000000e+00 : f32
    %28 = vector.broadcast %cst_11 : f32 to vector<2x32xf32>
    %29 = arith.addf %28, %27 : vector<2x32xf32>
    %30 = arith.divf %28, %29 : vector<2x32xf32>
    %31 = arith.mulf %22, %5 : vector<2x32xf32>
    %32 = arith.mulf %16, %24 : vector<2x32xf32>
    %33 = arith.addf %31, %32 : vector<2x32xf32>
    %34 = math.tanh %33 : vector<2x32xf32>
    %35 = arith.mulf %30, %34 : vector<2x32xf32>
    %36 = arith.index_cast %c0_i32_6 : i32 to index
    %c0_12 = arith.constant 0 : index
    %c0_13 = arith.constant 0 : index
    %37 = vector.load %arg6[%36, %c0_12, %c0_13] : memref<8x2x32xf32, #tpu.memory_space<vmem>>, vector<1x2x32xf32>
    %38 = vector.shape_cast %37 : vector<1x2x32xf32> to vector<2x32xf32>
    %39 = vector.shape_cast %35 : vector<2x32xf32> to vector<1x2x32xf32>
    tpu.vector_store %arg6[%36, %c0_12, %c0_13], %39 {strides = array<i32>} : memref<8x2x32xf32, #tpu.memory_space<vmem>>, vector<1x2x32xf32>,
    %c1_i32 = arith.constant 1 : i32
    %40 = arith.index_cast %c1_i32 : i32 to index
    %c0_14 = arith.constant 0 : index
    %c0_15 = arith.constant 0 : index
    %41 = vector.load %arg2[%40, %c0_14, %c0_15] : memref<8x2x128xf32, #tpu.memory_space<vmem>>, vector<1x2x128xf32>
    %42 = vector.shape_cast %41 : vector<1x2x128xf32> to vector<2x128xf32>
    %cst_16 = arith.constant dense<0.000000e+00> : vector<2x128xf32>
    %43 = tpu.matmul %35, %3, %cst_16 {dimension_numbers = #tpu.dot_dimension_numbers<[1], [0], [0], [1], [0, 0, 1, 1], [], []>} : vector<2x32xf32>, vector<32x128xf32>, vector<2x128xf32> -> vector<2x128xf32>
    %44 = arith.addf %42, %43 : vector<2x128xf32>
    %45 = vector.extract_strided_slice %44 {offsets = [0, 0], sizes = [2, 32], strides = [1, 1]} : vector<2x128xf32> to vector<2x32xf32>
    %46 = arith.negf %45 : vector<2x32xf32>
    %47 = math.exp %46 : vector<2x32xf32>
    %cst_17 = arith.constant 1.000000e+00 : f32
    %48 = vector.broadcast %cst_17 : f32 to vector<2x32xf32>
    %49 = arith.addf %48, %47 : vector<2x32xf32>
    %50 = arith.divf %48, %49 : vector<2x32xf32>
    %51 = vector.extract_strided_slice %44 {offsets = [0, 32], sizes = [2, 32], strides = [1, 1]} : vector<2x128xf32> to vector<2x32xf32>
    %52 = arith.negf %51 : vector<2x32xf32>
    %53 = math.exp %52 : vector<2x32xf32>
    %cst_18 = arith.constant 1.000000e+00 : f32
    %54 = vector.broadcast %cst_18 : f32 to vector<2x32xf32>
    %55 = arith.addf %54, %53 : vector<2x32xf32>
    %56 = arith.divf %54, %55 : vector<2x32xf32>
    %57 = vector.extract_strided_slice %44 {offsets = [0, 64], sizes = [2, 32], strides = [1, 1]} : vector<2x128xf32> to vector<2x32xf32>
    %58 = math.tanh %57 : vector<2x32xf32>
    %59 = vector.extract_strided_slice %44 {offsets = [0, 96], sizes = [2, 32], strides = [1, 1]} : vector<2x128xf32> to vector<2x32xf32>
    %60 = arith.negf %59 : vector<2x32xf32>
    %61 = math.exp %60 : vector<2x32xf32>
    %cst_19 = arith.constant 1.000000e+00 : f32
    %62 = vector.broadcast %cst_19 : f32 to vector<2x32xf32>
    %63 = arith.addf %62, %61 : vector<2x32xf32>
    %64 = arith.divf %62, %63 : vector<2x32xf32>
    %65 = arith.mulf %56, %33 : vector<2x32xf32>
    %66 = arith.mulf %50, %58 : vector<2x32xf32>
    %67 = arith.addf %65, %66 : vector<2x32xf32>
    %68 = math.tanh %67 : vector<2x32xf32>
    %69 = arith.mulf %64, %68 : vector<2x32xf32>
    %70 = arith.index_cast %c1_i32 : i32 to index
    %c0_20 = arith.constant 0 : index
    %c0_21 = arith.constant 0 : index
    %71 = vector.load %arg6[%70, %c0_20, %c0_21] : memref<8x2x32xf32, #tpu.memory_space<vmem>>, vector<1x2x32xf32>
    %72 = vector.shape_cast %71 : vector<1x2x32xf32> to vector<2x32xf32>
    %73 = vector.shape_cast %69 : vector<2x32xf32> to vector<1x2x32xf32>
    tpu.vector_store %arg6[%70, %c0_20, %c0_21], %73 {strides = array<i32>} : memref<8x2x32xf32, #tpu.memory_space<vmem>>, vector<1x2x32xf32>,
    %c2_i32 = arith.constant 2 : i32
    %74 = arith.index_cast %c2_i32 : i32 to index
    %c0_22 = arith.constant 0 : index
    %c0_23 = arith.constant 0 : index
    %75 = vector.load %arg2[%74, %c0_22, %c0_23] : memref<8x2x128xf32, #tpu.memory_space<vmem>>, vector<1x2x128xf32>
    %76 = vector.shape_cast %75 : vector<1x2x128xf32> to vector<2x128xf32>
    %cst_24 = arith.constant dense<0.000000e+00> : vector<2x128xf32>
    %77 = tpu.matmul %69, %3, %cst_24 {dimension_numbers = #tpu.dot_dimension_numbers<[1], [0], [0], [1], [0, 0, 1, 1], [], []>} : vector<2x32xf32>, vector<32x128xf32>, vector<2x128xf32> -> vector<2x128xf32>
    %78 = arith.addf %76, %77 : vector<2x128xf32>
    %79 = vector.extract_strided_slice %78 {offsets = [0, 0], sizes = [2, 32], strides = [1, 1]} : vector<2x128xf32> to vector<2x32xf32>
    %80 = arith.negf %79 : vector<2x32xf32>
    %81 = math.exp %80 : vector<2x32xf32>
    %cst_25 = arith.constant 1.000000e+00 : f32
    %82 = vector.broadcast %cst_25 : f32 to vector<2x32xf32>
    %83 = arith.addf %82, %81 : vector<2x32xf32>
    %84 = arith.divf %82, %83 : vector<2x32xf32>
    %85 = vector.extract_strided_slice %78 {offsets = [0, 32], sizes = [2, 32], strides = [1, 1]} : vector<2x128xf32> to vector<2x32xf32>
    %86 = arith.negf %85 : vector<2x32xf32>
    %87 = math.exp %86 : vector<2x32xf32>
    %cst_26 = arith.constant 1.000000e+00 : f32
    %88 = vector.broadcast %cst_26 : f32 to vector<2x32xf32>
    %89 = arith.addf %88, %87 : vector<2x32xf32>
    %90 = arith.divf %88, %89 : vector<2x32xf32>
    %91 = vector.extract_strided_slice %78 {offsets = [0, 64], sizes = [2, 32], strides = [1, 1]} : vector<2x128xf32> to vector<2x32xf32>
    %92 = math.tanh %91 : vector<2x32xf32>
    %93 = vector.extract_strided_slice %78 {offsets = [0, 96], sizes = [2, 32], strides = [1, 1]} : vector<2x128xf32> to vector<2x32xf32>
    %94 = arith.negf %93 : vector<2x32xf32>
    %95 = math.exp %94 : vector<2x32xf32>
    %cst_27 = arith.constant 1.000000e+00 : f32
    %96 = vector.broadcast %cst_27 : f32 to vector<2x32xf32>
    %97 = arith.addf %96, %95 : vector<2x32xf32>
    %98 = arith.divf %96, %97 : vector<2x32xf32>
    %99 = arith.mulf %90, %67 : vector<2x32xf32>
    %100 = arith.mulf %84, %92 : vector<2x32xf32>
    %101 = arith.addf %99, %100 : vector<2x32xf32>
    %102 = math.tanh %101 : vector<2x32xf32>
    %103 = arith.mulf %98, %102 : vector<2x32xf32>
    %104 = arith.index_cast %c2_i32 : i32 to index
    %c0_28 = arith.constant 0 : index
    %c0_29 = arith.constant 0 : index
    %105 = vector.load %arg6[%104, %c0_28, %c0_29] : memref<8x2x32xf32, #tpu.memory_space<vmem>>, vector<1x2x32xf32>
    %106 = vector.shape_cast %105 : vector<1x2x32xf32> to vector<2x32xf32>
    %107 = vector.shape_cast %103 : vector<2x32xf32> to vector<1x2x32xf32>
    tpu.vector_store %arg6[%104, %c0_28, %c0_29], %107 {strides = array<i32>} : memref<8x2x32xf32, #tpu.memory_space<vmem>>, vector<1x2x32xf32>,
    %c3_i32 = arith.constant 3 : i32
    %108 = arith.index_cast %c3_i32 : i32 to index
    %c0_30 = arith.constant 0 : index
    %c0_31 = arith.constant 0 : index
    %109 = vector.load %arg2[%108, %c0_30, %c0_31] : memref<8x2x128xf32, #tpu.memory_space<vmem>>, vector<1x2x128xf32>
    %110 = vector.shape_cast %109 : vector<1x2x128xf32> to vector<2x128xf32>
    %cst_32 = arith.constant dense<0.000000e+00> : vector<2x128xf32>
    %111 = tpu.matmul %103, %3, %cst_32 {dimension_numbers = #tpu.dot_dimension_numbers<[1], [0], [0], [1], [0, 0, 1, 1], [], []>} : vector<2x32xf32>, vector<32x128xf32>, vector<2x128xf32> -> vector<2x128xf32>
    %112 = arith.addf %110, %111 : vector<2x128xf32>
    %113 = vector.extract_strided_slice %112 {offsets = [0, 0], sizes = [2, 32], strides = [1, 1]} : vector<2x128xf32> to vector<2x32xf32>
    %114 = arith.negf %113 : vector<2x32xf32>
    %115 = math.exp %114 : vector<2x32xf32>
    %cst_33 = arith.constant 1.000000e+00 : f32
    %116 = vector.broadcast %cst_33 : f32 to vector<2x32xf32>
    %117 = arith.addf %116, %115 : vector<2x32xf32>
    %118 = arith.divf %116, %117 : vector<2x32xf32>
    %119 = vector.extract_strided_slice %112 {offsets = [0, 32], sizes = [2, 32], strides = [1, 1]} : vector<2x128xf32> to vector<2x32xf32>
    %120 = arith.negf %119 : vector<2x32xf32>
    %121 = math.exp %120 : vector<2x32xf32>
    %cst_34 = arith.constant 1.000000e+00 : f32
    %122 = vector.broadcast %cst_34 : f32 to vector<2x32xf32>
    %123 = arith.addf %122, %121 : vector<2x32xf32>
    %124 = arith.divf %122, %123 : vector<2x32xf32>
    %125 = vector.extract_strided_slice %112 {offsets = [0, 64], sizes = [2, 32], strides = [1, 1]} : vector<2x128xf32> to vector<2x32xf32>
    %126 = math.tanh %125 : vector<2x32xf32>
    %127 = vector.extract_strided_slice %112 {offsets = [0, 96], sizes = [2, 32], strides = [1, 1]} : vector<2x128xf32> to vector<2x32xf32>
    %128 = arith.negf %127 : vector<2x32xf32>
    %129 = math.exp %128 : vector<2x32xf32>
    %cst_35 = arith.constant 1.000000e+00 : f32
    %130 = vector.broadcast %cst_35 : f32 to vector<2x32xf32>
    %131 = arith.addf %130, %129 : vector<2x32xf32>
    %132 = arith.divf %130, %131 : vector<2x32xf32>
    %133 = arith.mulf %124, %101 : vector<2x32xf32>
    %134 = arith.mulf %118, %126 : vector<2x32xf32>
    %135 = arith.addf %133, %134 : vector<2x32xf32>
    %136 = math.tanh %135 : vector<2x32xf32>
    %137 = arith.mulf %132, %136 : vector<2x32xf32>
    %138 = arith.index_cast %c3_i32 : i32 to index
    %c0_36 = arith.constant 0 : index
    %c0_37 = arith.constant 0 : index
    %139 = vector.load %arg6[%138, %c0_36, %c0_37] : memref<8x2x32xf32, #tpu.memory_space<vmem>>, vector<1x2x32xf32>
    %140 = vector.shape_cast %139 : vector<1x2x32xf32> to vector<2x32xf32>
    %141 = vector.shape_cast %137 : vector<2x32xf32> to vector<1x2x32xf32>
    tpu.vector_store %arg6[%138, %c0_36, %c0_37], %141 {strides = array<i32>} : memref<8x2x32xf32, #tpu.memory_space<vmem>>, vector<1x2x32xf32>,
    %c4_i32 = arith.constant 4 : i32
    %142 = arith.index_cast %c4_i32 : i32 to index
    %c0_38 = arith.constant 0 : index
    %c0_39 = arith.constant 0 : index
    %143 = vector.load %arg2[%142, %c0_38, %c0_39] : memref<8x2x128xf32, #tpu.memory_space<vmem>>, vector<1x2x128xf32>
    %144 = vector.shape_cast %143 : vector<1x2x128xf32> to vector<2x128xf32>
    %cst_40 = arith.constant dense<0.000000e+00> : vector<2x128xf32>
    %145 = tpu.matmul %137, %3, %cst_40 {dimension_numbers = #tpu.dot_dimension_numbers<[1], [0], [0], [1], [0, 0, 1, 1], [], []>} : vector<2x32xf32>, vector<32x128xf32>, vector<2x128xf32> -> vector<2x128xf32>
    %146 = arith.addf %144, %145 : vector<2x128xf32>
    %147 = vector.extract_strided_slice %146 {offsets = [0, 0], sizes = [2, 32], strides = [1, 1]} : vector<2x128xf32> to vector<2x32xf32>
    %148 = arith.negf %147 : vector<2x32xf32>
    %149 = math.exp %148 : vector<2x32xf32>
    %cst_41 = arith.constant 1.000000e+00 : f32
    %150 = vector.broadcast %cst_41 : f32 to vector<2x32xf32>
    %151 = arith.addf %150, %149 : vector<2x32xf32>
    %152 = arith.divf %150, %151 : vector<2x32xf32>
    %153 = vector.extract_strided_slice %146 {offsets = [0, 32], sizes = [2, 32], strides = [1, 1]} : vector<2x128xf32> to vector<2x32xf32>
    %154 = arith.negf %153 : vector<2x32xf32>
    %155 = math.exp %154 : vector<2x32xf32>
    %cst_42 = arith.constant 1.000000e+00 : f32
    %156 = vector.broadcast %cst_42 : f32 to vector<2x32xf32>
    %157 = arith.addf %156, %155 : vector<2x32xf32>
    %158 = arith.divf %156, %157 : vector<2x32xf32>
    %159 = vector.extract_strided_slice %146 {offsets = [0, 64], sizes = [2, 32], strides = [1, 1]} : vector<2x128xf32> to vector<2x32xf32>
    %160 = math.tanh %159 : vector<2x32xf32>
    %161 = vector.extract_strided_slice %146 {offsets = [0, 96], sizes = [2, 32], strides = [1, 1]} : vector<2x128xf32> to vector<2x32xf32>
    %162 = arith.negf %161 : vector<2x32xf32>
    %163 = math.exp %162 : vector<2x32xf32>
    %cst_43 = arith.constant 1.000000e+00 : f32
    %164 = vector.broadcast %cst_43 : f32 to vector<2x32xf32>
    %165 = arith.addf %164, %163 : vector<2x32xf32>
    %166 = arith.divf %164, %165 : vector<2x32xf32>
    %167 = arith.mulf %158, %135 : vector<2x32xf32>
    %168 = arith.mulf %152, %160 : vector<2x32xf32>
    %169 = arith.addf %167, %168 : vector<2x32xf32>
    %170 = math.tanh %169 : vector<2x32xf32>
    %171 = arith.mulf %166, %170 : vector<2x32xf32>
    %172 = arith.index_cast %c4_i32 : i32 to index
    %c0_44 = arith.constant 0 : index
    %c0_45 = arith.constant 0 : index
    %173 = vector.load %arg6[%172, %c0_44, %c0_45] : memref<8x2x32xf32, #tpu.memory_space<vmem>>, vector<1x2x32xf32>
    %174 = vector.shape_cast %173 : vector<1x2x32xf32> to vector<2x32xf32>
    %175 = vector.shape_cast %171 : vector<2x32xf32> to vector<1x2x32xf32>
    tpu.vector_store %arg6[%172, %c0_44, %c0_45], %175 {strides = array<i32>} : memref<8x2x32xf32, #tpu.memory_space<vmem>>, vector<1x2x32xf32>,
    %c5_i32 = arith.constant 5 : i32
    %176 = arith.index_cast %c5_i32 : i32 to index
    %c0_46 = arith.constant 0 : index
    %c0_47 = arith.constant 0 : index
    %177 = vector.load %arg2[%176, %c0_46, %c0_47] : memref<8x2x128xf32, #tpu.memory_space<vmem>>, vector<1x2x128xf32>
    %178 = vector.shape_cast %177 : vector<1x2x128xf32> to vector<2x128xf32>
    %cst_48 = arith.constant dense<0.000000e+00> : vector<2x128xf32>
    %179 = tpu.matmul %171, %3, %cst_48 {dimension_numbers = #tpu.dot_dimension_numbers<[1], [0], [0], [1], [0, 0, 1, 1], [], []>} : vector<2x32xf32>, vector<32x128xf32>, vector<2x128xf32> -> vector<2x128xf32>
    %180 = arith.addf %178, %179 : vector<2x128xf32>
    %181 = vector.extract_strided_slice %180 {offsets = [0, 0], sizes = [2, 32], strides = [1, 1]} : vector<2x128xf32> to vector<2x32xf32>
    %182 = arith.negf %181 : vector<2x32xf32>
    %183 = math.exp %182 : vector<2x32xf32>
    %cst_49 = arith.constant 1.000000e+00 : f32
    %184 = vector.broadcast %cst_49 : f32 to vector<2x32xf32>
    %185 = arith.addf %184, %183 : vector<2x32xf32>
    %186 = arith.divf %184, %185 : vector<2x32xf32>
    %187 = vector.extract_strided_slice %180 {offsets = [0, 32], sizes = [2, 32], strides = [1, 1]} : vector<2x128xf32> to vector<2x32xf32>
    %188 = arith.negf %187 : vector<2x32xf32>
    %189 = math.exp %188 : vector<2x32xf32>
    %cst_50 = arith.constant 1.000000e+00 : f32
    %190 = vector.broadcast %cst_50 : f32 to vector<2x32xf32>
    %191 = arith.addf %190, %189 : vector<2x32xf32>
    %192 = arith.divf %190, %191 : vector<2x32xf32>
    %193 = vector.extract_strided_slice %180 {offsets = [0, 64], sizes = [2, 32], strides = [1, 1]} : vector<2x128xf32> to vector<2x32xf32>
    %194 = math.tanh %193 : vector<2x32xf32>
    %195 = vector.extract_strided_slice %180 {offsets = [0, 96], sizes = [2, 32], strides = [1, 1]} : vector<2x128xf32> to vector<2x32xf32>
    %196 = arith.negf %195 : vector<2x32xf32>
    %197 = math.exp %196 : vector<2x32xf32>
    %cst_51 = arith.constant 1.000000e+00 : f32
    %198 = vector.broadcast %cst_51 : f32 to vector<2x32xf32>
    %199 = arith.addf %198, %197 : vector<2x32xf32>
    %200 = arith.divf %198, %199 : vector<2x32xf32>
    %201 = arith.mulf %192, %169 : vector<2x32xf32>
    %202 = arith.mulf %186, %194 : vector<2x32xf32>
    %203 = arith.addf %201, %202 : vector<2x32xf32>
    %204 = math.tanh %203 : vector<2x32xf32>
    %205 = arith.mulf %200, %204 : vector<2x32xf32>
    %206 = arith.index_cast %c5_i32 : i32 to index
    %c0_52 = arith.constant 0 : index
    %c0_53 = arith.constant 0 : index
    %207 = vector.load %arg6[%206, %c0_52, %c0_53] : memref<8x2x32xf32, #tpu.memory_space<vmem>>, vector<1x2x32xf32>
    %208 = vector.shape_cast %207 : vector<1x2x32xf32> to vector<2x32xf32>
    %209 = vector.shape_cast %205 : vector<2x32xf32> to vector<1x2x32xf32>
    tpu.vector_store %arg6[%206, %c0_52, %c0_53], %209 {strides = array<i32>} : memref<8x2x32xf32, #tpu.memory_space<vmem>>, vector<1x2x32xf32>,
    %c6_i32 = arith.constant 6 : i32
    %210 = arith.index_cast %c6_i32 : i32 to index
    %c0_54 = arith.constant 0 : index
    %c0_55 = arith.constant 0 : index
    %211 = vector.load %arg2[%210, %c0_54, %c0_55] : memref<8x2x128xf32, #tpu.memory_space<vmem>>, vector<1x2x128xf32>
    %212 = vector.shape_cast %211 : vector<1x2x128xf32> to vector<2x128xf32>
    %cst_56 = arith.constant dense<0.000000e+00> : vector<2x128xf32>
    %213 = tpu.matmul %205, %3, %cst_56 {dimension_numbers = #tpu.dot_dimension_numbers<[1], [0], [0], [1], [0, 0, 1, 1], [], []>} : vector<2x32xf32>, vector<32x128xf32>, vector<2x128xf32> -> vector<2x128xf32>
    %214 = arith.addf %212, %213 : vector<2x128xf32>
    %215 = vector.extract_strided_slice %214 {offsets = [0, 0], sizes = [2, 32], strides = [1, 1]} : vector<2x128xf32> to vector<2x32xf32>
    %216 = arith.negf %215 : vector<2x32xf32>
    %217 = math.exp %216 : vector<2x32xf32>
    %cst_57 = arith.constant 1.000000e+00 : f32
    %218 = vector.broadcast %cst_57 : f32 to vector<2x32xf32>
    %219 = arith.addf %218, %217 : vector<2x32xf32>
    %220 = arith.divf %218, %219 : vector<2x32xf32>
    %221 = vector.extract_strided_slice %214 {offsets = [0, 32], sizes = [2, 32], strides = [1, 1]} : vector<2x128xf32> to vector<2x32xf32>
    %222 = arith.negf %221 : vector<2x32xf32>
    %223 = math.exp %222 : vector<2x32xf32>
    %cst_58 = arith.constant 1.000000e+00 : f32
    %224 = vector.broadcast %cst_58 : f32 to vector<2x32xf32>
    %225 = arith.addf %224, %223 : vector<2x32xf32>
    %226 = arith.divf %224, %225 : vector<2x32xf32>
    %227 = vector.extract_strided_slice %214 {offsets = [0, 64], sizes = [2, 32], strides = [1, 1]} : vector<2x128xf32> to vector<2x32xf32>
    %228 = math.tanh %227 : vector<2x32xf32>
    %229 = vector.extract_strided_slice %214 {offsets = [0, 96], sizes = [2, 32], strides = [1, 1]} : vector<2x128xf32> to vector<2x32xf32>
    %230 = arith.negf %229 : vector<2x32xf32>
    %231 = math.exp %230 : vector<2x32xf32>
    %cst_59 = arith.constant 1.000000e+00 : f32
    %232 = vector.broadcast %cst_59 : f32 to vector<2x32xf32>
    %233 = arith.addf %232, %231 : vector<2x32xf32>
    %234 = arith.divf %232, %233 : vector<2x32xf32>
    %235 = arith.mulf %226, %203 : vector<2x32xf32>
    %236 = arith.mulf %220, %228 : vector<2x32xf32>
    %237 = arith.addf %235, %236 : vector<2x32xf32>
    %238 = math.tanh %237 : vector<2x32xf32>
    %239 = arith.mulf %234, %238 : vector<2x32xf32>
    %240 = arith.index_cast %c6_i32 : i32 to index
    %c0_60 = arith.constant 0 : index
    %c0_61 = arith.constant 0 : index
    %241 = vector.load %arg6[%240, %c0_60, %c0_61] : memref<8x2x32xf32, #tpu.memory_space<vmem>>, vector<1x2x32xf32>
    %242 = vector.shape_cast %241 : vector<1x2x32xf32> to vector<2x32xf32>
    %243 = vector.shape_cast %239 : vector<2x32xf32> to vector<1x2x32xf32>
    tpu.vector_store %arg6[%240, %c0_60, %c0_61], %243 {strides = array<i32>} : memref<8x2x32xf32, #tpu.memory_space<vmem>>, vector<1x2x32xf32>,
    %c7_i32 = arith.constant 7 : i32
    %244 = arith.index_cast %c7_i32 : i32 to index
    %c0_62 = arith.constant 0 : index
    %c0_63 = arith.constant 0 : index
    %245 = vector.load %arg2[%244, %c0_62, %c0_63] : memref<8x2x128xf32, #tpu.memory_space<vmem>>, vector<1x2x128xf32>
    %246 = vector.shape_cast %245 : vector<1x2x128xf32> to vector<2x128xf32>
    %cst_64 = arith.constant dense<0.000000e+00> : vector<2x128xf32>
    %247 = tpu.matmul %239, %3, %cst_64 {dimension_numbers = #tpu.dot_dimension_numbers<[1], [0], [0], [1], [0, 0, 1, 1], [], []>} : vector<2x32xf32>, vector<32x128xf32>, vector<2x128xf32> -> vector<2x128xf32>
    %248 = arith.addf %246, %247 : vector<2x128xf32>
    %249 = vector.extract_strided_slice %248 {offsets = [0, 0], sizes = [2, 32], strides = [1, 1]} : vector<2x128xf32> to vector<2x32xf32>
    %250 = arith.negf %249 : vector<2x32xf32>
    %251 = math.exp %250 : vector<2x32xf32>
    %cst_65 = arith.constant 1.000000e+00 : f32
    %252 = vector.broadcast %cst_65 : f32 to vector<2x32xf32>
    %253 = arith.addf %252, %251 : vector<2x32xf32>
    %254 = arith.divf %252, %253 : vector<2x32xf32>
    %255 = vector.extract_strided_slice %248 {offsets = [0, 32], sizes = [2, 32], strides = [1, 1]} : vector<2x128xf32> to vector<2x32xf32>
    %256 = arith.negf %255 : vector<2x32xf32>
    %257 = math.exp %256 : vector<2x32xf32>
    %cst_66 = arith.constant 1.000000e+00 : f32
    %258 = vector.broadcast %cst_66 : f32 to vector<2x32xf32>
    %259 = arith.addf %258, %257 : vector<2x32xf32>
    %260 = arith.divf %258, %259 : vector<2x32xf32>
    %261 = vector.extract_strided_slice %248 {offsets = [0, 64], sizes = [2, 32], strides = [1, 1]} : vector<2x128xf32> to vector<2x32xf32>
    %262 = math.tanh %261 : vector<2x32xf32>
    %263 = vector.extract_strided_slice %248 {offsets = [0, 96], sizes = [2, 32], strides = [1, 1]} : vector<2x128xf32> to vector<2x32xf32>
    %264 = arith.negf %263 : vector<2x32xf32>
    %265 = math.exp %264 : vector<2x32xf32>
    %cst_67 = arith.constant 1.000000e+00 : f32
    %266 = vector.broadcast %cst_67 : f32 to vector<2x32xf32>
    %267 = arith.addf %266, %265 : vector<2x32xf32>
    %268 = arith.divf %266, %267 : vector<2x32xf32>
    %269 = arith.mulf %260, %237 : vector<2x32xf32>
    %270 = arith.mulf %254, %262 : vector<2x32xf32>
    %271 = arith.addf %269, %270 : vector<2x32xf32>
    %272 = math.tanh %271 : vector<2x32xf32>
    %273 = arith.mulf %268, %272 : vector<2x32xf32>
    %274 = arith.index_cast %c7_i32 : i32 to index
    %c0_68 = arith.constant 0 : index
    %c0_69 = arith.constant 0 : index
    %275 = vector.load %arg6[%274, %c0_68, %c0_69] : memref<8x2x32xf32, #tpu.memory_space<vmem>>, vector<1x2x32xf32>
    %276 = vector.shape_cast %275 : vector<1x2x32xf32> to vector<2x32xf32>
    %277 = vector.shape_cast %273 : vector<2x32xf32> to vector<1x2x32xf32>
    tpu.vector_store %arg6[%274, %c0_68, %c0_69], %277 {strides = array<i32>} : memref<8x2x32xf32, #tpu.memory_space<vmem>>, vector<1x2x32xf32>,
    %c8_i32 = arith.constant 8 : i32
    %c0_70 = arith.constant 0 : index
    %c0_71 = arith.constant 0 : index
    %278 = vector.load %arg9[%c0_70, %c0_71] : memref<2x32xf32, #tpu.memory_space<vmem>>, vector<2x32xf32>
    tpu.vector_store %arg9[%c0_70, %c0_71], %273 {strides = array<i32>} : memref<2x32xf32, #tpu.memory_space<vmem>>, vector<2x32xf32>,
    %c0_72 = arith.constant 0 : index
    %c0_73 = arith.constant 0 : index
    %279 = vector.load %arg10[%c0_72, %c0_73] : memref<2x32xf32, #tpu.memory_space<vmem>>, vector<2x32xf32>
    tpu.vector_store %arg10[%c0_72, %c0_73], %271 {strides = array<i32>} : memref<2x32xf32, #tpu.memory_space<vmem>>, vector<2x32xf32>,
    %c0_i32_74 = arith.constant 0 : i32
    %280 = arith.cmpi eq, %arg1, %c0_i32_74 : i32
    %281 = arith.extui %280 : i1 to i32
    %c0_i32_75 = arith.constant 0 : i32
    %282 = arith.cmpi ne, %281, %c0_i32_75 : i32
    scf.if %282 {
      %c0_76 = arith.constant 0 : index
      %c0_77 = arith.constant 0 : index
      %283 = vector.load %arg7[%c0_76, %c0_77] : memref<2x32xf32, #tpu.memory_space<vmem>>, vector<2x32xf32>
      tpu.vector_store %arg7[%c0_76, %c0_77], %273 {strides = array<i32>} : memref<2x32xf32, #tpu.memory_space<vmem>>, vector<2x32xf32>,
      %c0_78 = arith.constant 0 : index
      %c0_79 = arith.constant 0 : index
      %284 = vector.load %arg8[%c0_78, %c0_79] : memref<2x32xf32, #tpu.memory_space<vmem>>, vector<2x32xf32>
      tpu.vector_store %arg8[%c0_78, %c0_79], %271 {strides = array<i32>} : memref<2x32xf32, #tpu.memory_space<vmem>>, vector<2x32xf32>,
    } else {
    }
    return
  }
  func.func @transform_0(%arg0: i32, %arg1: i32) -> (i32, i32, i32) {
    %c0_i32 = arith.constant 0 : i32
    %c0_i32_0 = arith.constant 0 : i32
    return %arg1, %arg0, %c0_i32 : i32, i32, i32
  }
  func.func @transform_1(%arg0: i32, %arg1: i32) -> (i32, i32) {
    %c0_i32 = arith.constant 0 : i32
    %c0_i32_0 = arith.constant 0 : i32
    %c0_i32_1 = arith.constant 0 : i32
    return %c0_i32, %c0_i32_0 : i32, i32
  }
  func.func @transform_2(%arg0: i32, %arg1: i32) -> (i32, i32) {
    %c0_i32 = arith.constant 0 : i32
    %c0_i32_0 = arith.constant 0 : i32
    return %arg0, %c0_i32 : i32, i32
  }
  func.func @transform_3(%arg0: i32, %arg1: i32) -> (i32, i32) {
    %c0_i32 = arith.constant 0 : i32
    %c0_i32_0 = arith.constant 0 : i32
    return %arg0, %c0_i32 : i32, i32
  }
  func.func @transform_4(%arg0: i32, %arg1: i32) -> (i32, i32, i32) {
    %c0_i32 = arith.constant 0 : i32
    %c0_i32_0 = arith.constant 0 : i32
    return %arg1, %arg0, %c0_i32 : i32, i32, i32
  }
  func.func @transform_5(%arg0: i32, %arg1: i32) -> (i32, i32) {
    %c0_i32 = arith.constant 0 : i32
    %c0_i32_0 = arith.constant 0 : i32
    return %arg0, %c0_i32 : i32, i32
  }
  func.func @transform_6(%arg0: i32, %arg1: i32) -> (i32, i32) {
    %c0_i32 = arith.constant 0 : i32
    %c0_i32_0 = arith.constant 0 : i32
    return %arg0, %c0_i32 : i32, i32
  }
}

</mosaic_0001>

<bundles_post_ra>
// kernel: tpu_custom_call.1
= control target key start
LH: loop header
LB: loop body
LE: loop exit
PB: predicated region body
PF: predicated region fallthrough
CT: control target
= control target key end

     0   :  { %12 = vsyncpa [#allocation5], 0  ;;  %s1688_s0 = inlined_call_operand.hbm [shape: f32[8,2,128], index: 0, kind: input, shape index: {}]   ;;  %s1689_s1 = inlined_call_operand.hbm [shape: f32[32,128], index: 1, kind: input, shape index: {}]   ;;  %s1690_s2 = inlined_call_operand.hbm [shape: f32[2,32], index: 2, kind: input, shape index: {}]   ;;  %s1691_s3 = inlined_call_operand.hbm [shape: f32[2,32], index: 3, kind: input, shape index: {}]   ;;  %s1692_s4 = inlined_call_operand.hbm [shape: f32[8,2,32], index: 4, kind: output, shape index: {0}]   ;;  %s1693_s5 = inlined_call_operand.hbm [shape: f32[2,32], index: 5, kind: output, shape index: {1}]   ;;  %s1694_s6 = inlined_call_operand.hbm [shape: f32[2,32], index: 6, kind: output, shape index: {2}]  }
   0x1   :  { %13 = vsyncpa [#allocation8], 0 }
   0x2   :  { %14 = vsyncpa [#allocation11], 0 }
   0x3   :  { %15 = vsyncpa [#allocation6], 0 }
   0x4   :  { %16 = vsyncpa [#allocation14], 0  ;;  %s1426_s21 = smov [#allocation7]   ;;  %s1262_s25 = scalar_lea.hbm %s1689_s1, 512 }
   0x5   :  { %s34_s22 = sshll.u32 %s1426_s21, 4  ;;  %p1263_p0 = scmp.ne.s32.totalorder %s1689_s1, %s1262_s25  ;;  %s35_s22 = int_to_ptr.vmem [resolvable:$true] %s34_s22 }
   0x6   :  { %p1266_p1 = scmp.lt.u32.totalorder %s1262_s25, %s1689_s1 }
   0x8   :  { %p1268_p2 = pnand %p1266_p1, %p1263_p0 }
   0xa   :  { %1271 = shalt.err (!%p1268_p2)
}
   0xb   :  { %s1272_s30 = scalar_lea.vmem %s35_s22, 512  ;;  %p1277_p4 = scmp.lt.s32.totalorder %s35_s22, %s35_s22 }
   0xc   :  { %p1273_p3 = scmp.ne.s32.totalorder %s35_s22, %s1272_s30  ;;  %p1278_p5 = scmp.lt.s32.totalorder %s1272_s30, %s1272_s30 }
   0xe   :  { %p1279_p6 = por %p1278_p5, %p1277_p4 }
  0x10   :  { %p1280_p7 = pnand %p1279_p6, %p1273_p3 }
  0x12   :  { %1283 = shalt.err (!%p1280_p7)
}
  0x13   :  { %s1427_s7 = smov 128   ;;  %s1428_s8 = smov 8  }
  0x14   :  { %40 = dma.hbm_to_vmem [thread:$0]  %s1689_s1, 512, %s35_s22, [#allocation8], %s1427_s7, %s1427_s7, %s1428_s8  }
  0x15   :  { %s1429_s11 = smov [#allocation4]   ;;  %s1284_s15 = scalar_lea.hbm %s1688_s0, 256 }
  0x16   :  { %s22_s12 = sshll.u32 %s1429_s11, 4  ;;  %p1285_p8 = scmp.ne.s32.totalorder %s1688_s0, %s1284_s15  ;;  %s23_s12 = int_to_ptr.vmem [resolvable:$true] %s22_s12 }
  0x17   :  { %p1288_p9 = scmp.lt.u32.totalorder %s1284_s15, %s1688_s0 }
  0x19   :  { %p1290_p10 = pnand %p1288_p9, %p1285_p8 }
  0x1b   :  { %1293 = shalt.err (!%p1290_p10)
}
  0x1c   :  { %s1294_s20 = scalar_lea.vmem %s23_s12, 256  ;;  %p1299_p12 = scmp.lt.s32.totalorder %s23_s12, %s23_s12 }
  0x1d   :  { %p1295_p11 = scmp.ne.s32.totalorder %s23_s12, %s1294_s20  ;;  %p1300_p13 = scmp.lt.s32.totalorder %s1294_s20, %s1294_s20 }
  0x1f   :  { %p1301_p0 = por %p1300_p13, %p1299_p12 }
  0x21   :  { %p1302_p1 = pnand %p1301_p0, %p1295_p11 }
  0x23   :  { %1305 = shalt.err (!%p1302_p1)
}
  0x24   :  { %s1430_s1 = smov 32   ;;  %s1431_s21 = smov 2  }
  0x25   :  { %28 = dma.hbm_to_vmem [thread:$0]  %s1688_s0, 256, %s23_s12, [#allocation5], %s1430_s1, %s1430_s1, %s1431_s21  }
  0x26   :  { %s1432_s24 = smov [#allocation9]   ;;  %s1433_s26 = smov [#allocation10]  }
  0x27   :  { %s47_s25 = sshll.u32 %s1432_s24, 4  ;;  %s57_s27 = sshll.u32 %s1433_s26, 4  ;;  %s48_s25 = int_to_ptr.vmem [resolvable:$true] %s47_s25  ;;  %s58_s27 = int_to_ptr.vmem [resolvable:$true] %s57_s27 }
  0x28   :  { %s1306_s30 = scalar_lea.hbm %s1690_s2, 32 }
  0x29   :  { %p1307_p2 = scmp.ne.s32.totalorder %s1690_s2, %s1306_s30  ;;  %p1310_p3 = scmp.lt.u32.totalorder %s1306_s30, %s1690_s2 }
  0x2b   :  { %p1312_p4 = pnand %p1310_p3, %p1307_p2 }
  0x2d   :  { %1315 = shalt.err (!%p1312_p4)
}
  0x2e   :  { %s1316_s0 = scalar_lea.vmem %s48_s25, 32  ;;  %p1321_p6 = scmp.lt.s32.totalorder %s48_s25, %s48_s25 }
  0x2f   :  { %p1317_p5 = scmp.ne.s32.totalorder %s48_s25, %s1316_s0  ;;  %p1322_p7 = scmp.lt.s32.totalorder %s1316_s0, %s1316_s0 }
  0x31   :  { %p1323_p8 = por %p1322_p7, %p1321_p6 }
  0x33   :  { %p1324_p9 = pnand %p1323_p8, %p1317_p5 }
  0x35   :  { %1327 = shalt.err (!%p1324_p9)
}
  0x36   :  { %50 = dma.hbm_to_vmem [thread:$0]  %s1690_s2, 32, %s48_s25, [#allocation8]  }
  0x37   :  { %s1328_s15 = scalar_lea.hbm %s1691_s3, 32 }
  0x38   :  { %p1329_p10 = scmp.ne.s32.totalorder %s1691_s3, %s1328_s15  ;;  %p1332_p11 = scmp.lt.u32.totalorder %s1328_s15, %s1691_s3 }
  0x3a   :  { %p1334_p12 = pnand %p1332_p11, %p1329_p10 }
  0x3c   :  { %1337 = shalt.err (!%p1334_p12)
}
  0x3d   :  { %s1338_s20 = scalar_lea.vmem %s58_s27, 32  ;;  %p1343_p0 = scmp.lt.s32.totalorder %s58_s27, %s58_s27 }
  0x3e   :  { %p1339_p13 = scmp.ne.s32.totalorder %s58_s27, %s1338_s20  ;;  %p1344_p1 = scmp.lt.s32.totalorder %s1338_s20, %s1338_s20 }
  0x40   :  { %p1345_p2 = por %p1344_p1, %p1343_p0 }
  0x42   :  { %p1346_p3 = pnand %p1345_p2, %p1339_p13 }
  0x44   :  { %1349 = shalt.err (!%p1346_p3)
}
  0x45   :  { %60 = dma.hbm_to_vmem [thread:$0]  %s1691_s3, 32, %s58_s27, [#allocation11]  }
  0x46   :  { %1416 = dma.done.wait [#allocation5], 256  }
  0x47   :  { %1417 = vsyncadd [#allocation5], 4294967040 }
  0x48   :  { %1418 = dma.done.wait [#allocation8], 544  }
  0x49   :  { %1419 = vsyncadd [#allocation8], 4294966752 }
  0x4a   :  { %1420 = dma.done.wait [#allocation11], 32  }
  0x4b   :  { %1421 = vsyncadd [#allocation11], 4294967264  ;;  %v1434_v0 = vmov 0.0|0.0   ;;  %vm1435_vm0 = vmmov 0   ;;  %v1436_v1 = vmov 0.0   ;;  %vm78_vm1 = vcmask 254976  }
  0x4c   :  { %1134 = vmatprep.subr.bf16.mxu0 %v1434_v0  ;;  %1054 = vmatprep.mubr.msk.f32.mxu0 %vm1435_vm0, %v1436_v1  ;;  %v82_v2 = vld [vmem:[#allocation7] sm:$0xff]  ;;  %v83_v3 = vld [vmem:[#allocation7 + $0x8] sm:$0xff]  ;;  %v84_v4 = vld [vmem:[#allocation7 + $0x10] sm:$0xff]  ;;  %vm89_vm2 = vcmask 261120   ;;  %s1437_s3 = smov 64   ;;  %s1438_s23 = smov 96  }
  0x4d   :  { %1140 = vmatprep.subr.bf16.mxu1 %v1434_v0  ;;  %1065 = vmatprep.mubr.msk.f32.mxu1 %vm1435_vm0, %v1436_v1  ;;  %v1534_v5 = vpack.c.bf16 %v83_v3, %v82_v2  ;;  %v85_v6 = vld [vmem:[#allocation7 + $0x18] sm:$0xff]  ;;  %v77_v7 = vld [vmem:[#allocation9] sm:$0x3]  ;;  %v80_v10 = vld [vmem:[#allocation10] sm:$0x3]  ;;  %s1439_s24 = smov [#allocation13]  }
  0x4e   :  { %79 = vst.msk [vmem:[#allocation2] sm:$0x3] %vm78_vm1, %v77_v7  ;;  %v1538_v8 = vpack.c.bf16 %v85_v6, %v84_v4  ;;  %81 = vst.msk [vmem:[#allocation3] sm:$0x3] %vm78_vm1, %v80_v10  ;;  %v88_v11 = vld [vmem:[#allocation4] sm:$0x3] }
  0x4f   :  { %1136 = vmatpush3.bf16.msra.mxu0 %v1534_v5  ;;  %1142 = vmatpush3.bf16.msra.mxu1 %v1534_v5  ;;  %v199_v31 = vld [vmem:[#allocation4 + $0x2] sm:$0x3]  ;;  %v304_v49 = vld [vmem:[#allocation4 + $0x4] sm:$0x3]  ;;  %v409_v6 = vld [vmem:[#allocation4 + $0x6] sm:$0x3] }
  0x50   :  { %1137 = vmatprep.subr.bf16.mxu0 %v1434_v0  ;;  %1143 = vmatprep.subr.bf16.mxu1 %v1434_v0  ;;  %s962_s25 = sshll.u32 %s1439_s24, 4  ;;  %s1440_s26 = smov [#allocation12]   ;;  %s963_s25 = int_to_ptr.vmem [resolvable:$true] %s962_s25 }
  0x51   :  { %s949_s27 = sshll.u32 %s1440_s26, 4  ;;  %s1441_s28 = smov [#allocation15]   ;;  %s1632_s27 = int_to_ptr.vmem [resolvable:$true] %s949_s27 }
  0x52   :  { %s972_s29 = sshll.u32 %s1441_s28, 4  ;;  %s1350_s30 = scalar_lea.vmem %s963_s25, 32  ;;  %s1637_s29 = int_to_ptr.vmem [resolvable:$true] %s972_s29 }
  0x53   :  { %1139 = vmatpush3.bf16.msra.mxu0 %v1538_v8  ;;  %1145 = vmatpush3.bf16.msra.mxu1 %v1538_v8  ;;  %p1351_p4 = scmp.ne.s32.totalorder %s963_s25, %s1350_s30  ;;  %p1355_p5 = scmp.lt.s32.totalorder %s963_s25, %s963_s25 }
  0x54   :  { %1146 = vmatprep.subr.bf16.mxu0 %v1434_v0  ;;  %1152 = vmatprep.subr.bf16.mxu1 %v1434_v0  ;;  %p1356_p6 = scmp.lt.s32.totalorder %s1350_s30, %s1350_s30 }
  0x55   :  { %v86_v9 = vld [vmem:[#allocation2] sm:$0x3]  ;;  %v87_v16 = vld [vmem:[#allocation3] sm:$0x3] }
  0x56   :  { %1055 = vmatmul.mubr.msk.f32.vlgmr.msra.gmra.mrb[0].mxu0 %vm89_vm2, %v86_v9  ;;  %p1357_p7 = por %p1356_p6, %p1355_p5 }
  0x57   :  { %1148 = vmatpush3.bf16.msra.mxu0 %v1534_v5  ;;  %1076 = vmatprep.mubr.msk.f32.mxu0 %vm1435_vm0, %v1436_v1 }
  0x58   :  { %1149 = vmatprep.subr.bf16.mxu0 %v1434_v0  ;;  %p1358_p8 = pnand %p1357_p7, %p1351_p4 }
  0x5b   :  { %1151 = vmatpush3.bf16.msra.mxu0 %v1538_v8 }
  0x5c   :  { %1158 = vmatprep.subr.bf16.mxu0 %v1434_v0 }
 0x129   :  { %v159_v12 = vpop.f32.mrb[0].mxu0 }
 0x12a   :  { %v163_v13 = vadd.f32 %v159_v12, %v88_v11  ;;  %v1056_v14 = vpop.f32.mrb[1].mxu0 }
 0x12c   :  { %1198 = vtanh.f32 %v163_v13  ;;  %v991_v17 = vmul.f32 -1.442695, %v163_v13 }
 0x12e   :  { %1200 = vpow2.f32 %v991_v17 }
 0x136   :  { %v1199_v15 = vpop.eup %1198 }
 0x137   :  { %177 = vrot.lane.b32.xlu0 %v1199_v15, %s1437_s3 }
 0x138   :  { %v1201_v18 = vpop.eup %1200 }
 0x139   :  { %v167_v19 = vadd.f32 1.0, %v1201_v18 }
 0x13b   :  { %172 = vrot.lane.b32.xlu0 %v87_v16, %s1430_s1  ;;  %1202 = vrcp.f32 %v167_v19 }
 0x145   :  { %v1203_v20 = vpop.eup %1202 }
 0x1a9   :  { %v178_v21 = vpop.permute.xlu0 %177 }
 0x1aa   :  { %v180_v22 = vmul.f32 %v1203_v20, %v178_v21 }
 0x1ac   :  { %182 = vrot.lane.b32.xlu1 %v180_v22, %s1430_s1 }
 0x1ad   :  { %v173_v23 = vpop.permute.xlu0 %172 }
 0x1ae   :  { %v175_v24 = vmul.f32 %v1203_v20, %v173_v23 }
 0x21e   :  { %v183_v25 = vpop.permute.xlu1 %182 }
 0x21f   :  { %v185_v26 = vadd.f32 %v183_v25, %v175_v24  ;;  %v514_v25 = vld [vmem:[#allocation4 + $0x8] sm:$0x3] }
 0x221   :  { %1204 = vtanh.f32 %v185_v26 }
 0x22b   :  { %v1205_v27 = vpop.eup %1204 }
 0x22c   :  { %188 = vrot.lane.b32.xlu1 %v1205_v27, %s1437_s3 }
 0x29e   :  { %v189_v28 = vpop.permute.xlu1 %188 }
 0x29f   :  { %v191_v29 = vmul.f32 %v1203_v20, %v189_v28 }
 0x2a1   :  { %193 = vrot.lane.b32.xlu0 %v191_v29, %s1430_s1 }
 0x313   :  { %v194_v30 = vpop.permute.xlu0 %193 }
 0x314   :  { %197 = vst.msk [vmem:[#allocation12] sm:$0x3] %vm78_vm1, %v194_v30  ;;  %1066 = vmatmul.mubr.msk.f32.vlgmr.msra.gmra.mrb[0].mxu1 %vm89_vm2, %v194_v30 }
 0x315   :  { %1154 = vmatpush3.bf16.msra.mxu1 %v1534_v5  ;;  %1087 = vmatprep.mubr.msk.f32.mxu1 %vm1435_vm0, %v1436_v1 }
 0x316   :  { %1155 = vmatprep.subr.bf16.mxu1 %v1434_v0 }
 0x319   :  { %1157 = vmatpush3.bf16.msra.mxu1 %v1538_v8 }
 0x31a   :  { %1164 = vmatprep.subr.bf16.mxu1 %v1434_v0 }
 0x3e7   :  { %v268_v32 = vpop.f32.mrb[0].mxu1 }
 0x3e8   :  { %v272_v33 = vadd.f32 %v268_v32, %v199_v31  ;;  %v1067_v34 = vpop.f32.mrb[1].mxu1 }
 0x3ea   :  { %1206 = vtanh.f32 %v272_v33  ;;  %v993_v36 = vmul.f32 -1.442695, %v272_v33 }
 0x3ec   :  { %1208 = vpow2.f32 %v993_v36 }
 0x3f4   :  { %v1207_v35 = vpop.eup %1206 }
 0x3f5   :  { %282 = vrot.lane.b32.xlu1 %v1207_v35, %s1437_s3 }
 0x3f6   :  { %v1209_v37 = vpop.eup %1208 }
 0x3f7   :  { %v276_v38 = vadd.f32 1.0, %v1209_v37 }
 0x3f9   :  { %1210 = vrcp.f32 %v276_v38 }
 0x403   :  { %v1211_v39 = vpop.eup %1210 }
 0x404   :  { %v280_v42 = vmul.f32 %v1211_v39, %v185_v26 }
 0x467   :  { %v283_v40 = vpop.permute.xlu1 %282 }
 0x468   :  { %v285_v41 = vmul.f32 %v1211_v39, %v283_v40 }
 0x46a   :  { %287 = vrot.lane.b32.xlu0 %v285_v41, %s1430_s1 }
 0x4dc   :  { %v288_v43 = vpop.permute.xlu0 %287 }
 0x4dd   :  { %v290_v44 = vadd.f32 %v288_v43, %v280_v42  ;;  %v619_v43 = vld [vmem:[#allocation4 + $0xa] sm:$0x3] }
 0x4df   :  { %1212 = vtanh.f32 %v290_v44 }
 0x4e9   :  { %v1213_v45 = vpop.eup %1212 }
 0x4ea   :  { %293 = vrot.lane.b32.xlu1 %v1213_v45, %s1437_s3 }
 0x55c   :  { %v294_v46 = vpop.permute.xlu1 %293 }
 0x55d   :  { %v296_v47 = vmul.f32 %v1211_v39, %v294_v46 }
 0x55f   :  { %298 = vrot.lane.b32.xlu0 %v296_v47, %s1430_s1 }
 0x5d1   :  { %v299_v48 = vpop.permute.xlu0 %298 }
 0x5d2   :  { %302 = vst.msk [vmem:[#allocation12 + $0x2] sm:$0x3] %vm78_vm1, %v299_v48  ;;  %1077 = vmatmul.mubr.msk.f32.vlgmr.msra.gmra.mrb[2].mxu0 %vm89_vm2, %v299_v48 }
 0x5d3   :  { %1160 = vmatpush3.bf16.msra.mxu0 %v1534_v5  ;;  %1098 = vmatprep.mubr.msk.f32.mxu0 %vm1435_vm0, %v1436_v1 }
 0x5d4   :  { %1161 = vmatprep.subr.bf16.mxu0 %v1434_v0 }
 0x5d7   :  { %1163 = vmatpush3.bf16.msra.mxu0 %v1538_v8 }
 0x5d8   :  { %1170 = vmatprep.subr.bf16.mxu0 %v1434_v0 }
 0x6a5   :  { %v373_v50 = vpop.f32.mrb[2].mxu0 }
 0x6a6   :  { %v377_v51 = vadd.f32 %v373_v50, %v304_v49  ;;  %v1078_v52 = vpop.f32.mrb[3].mxu0 }
 0x6a8   :  { %1214 = vtanh.f32 %v377_v51  ;;  %v995_v54 = vmul.f32 -1.442695, %v377_v51 }
 0x6aa   :  { %1216 = vpow2.f32 %v995_v54 }
 0x6b2   :  { %v1215_v53 = vpop.eup %1214 }
 0x6b3   :  { %387 = vrot.lane.b32.xlu1 %v1215_v53, %s1437_s3 }
 0x6b4   :  { %v1217_v55 = vpop.eup %1216 }
 0x6b5   :  { %v381_v56 = vadd.f32 1.0, %v1217_v55 }
 0x6b7   :  { %1218 = vrcp.f32 %v381_v56 }
 0x6c1   :  { %v1219_v57 = vpop.eup %1218 }
 0x6c2   :  { %v385_v60 = vmul.f32 %v1219_v57, %v290_v44 }
 0x725   :  { %v388_v58 = vpop.permute.xlu1 %387 }
 0x726   :  { %v390_v59 = vmul.f32 %v1219_v57, %v388_v58 }
 0x728   :  { %392 = vrot.lane.b32.xlu0 %v390_v59, %s1430_s1 }
 0x79a   :  { %v393_v61 = vpop.permute.xlu0 %392 }
 0x79b   :  { %v395_v62 = vadd.f32 %v393_v61, %v385_v60 }
 0x79d   :  { %1220 = vtanh.f32 %v395_v62 }
 0x7a7   :  { %v1221_v63 = vpop.eup %1220 }
 0x7a8   :  { %398 = vrot.lane.b32.xlu1 %v1221_v63, %s1437_s3 }
 0x81a   :  { %v399_v2 = vpop.permute.xlu1 %398 }
 0x81b   :  { %v401_v3 = vmul.f32 %v1219_v57, %v399_v2  ;;  %v724_v57 = vld [vmem:[#allocation4 + $0xc] sm:$0x3] }
 0x81d   :  { %403 = vrot.lane.b32.xlu0 %v401_v3, %s1430_s1 }
 0x88f   :  { %v404_v4 = vpop.permute.xlu0 %403 }
 0x890   :  { %407 = vst.msk [vmem:[#allocation12 + $0x4] sm:$0x3] %vm78_vm1, %v404_v4  ;;  %1088 = vmatmul.mubr.msk.f32.vlgmr.msra.gmra.mrb[2].mxu1 %vm89_vm2, %v404_v4 }
 0x891   :  { %1166 = vmatpush3.bf16.msra.mxu1 %v1534_v5  ;;  %1109 = vmatprep.mubr.msk.f32.mxu1 %vm1435_vm0, %v1436_v1 }
 0x892   :  { %1167 = vmatprep.subr.bf16.mxu1 %v1434_v0 }
 0x895   :  { %1169 = vmatpush3.bf16.msra.mxu1 %v1538_v8 }
 0x896   :  { %1176 = vmatprep.subr.bf16.mxu1 %v1434_v0 }
 0x963   :  { %v478_v7 = vpop.f32.mrb[2].mxu1 }
 0x964   :  { %v482_v9 = vadd.f32 %v478_v7, %v409_v6  ;;  %v1089_v10 = vpop.f32.mrb[3].mxu1 }
 0x966   :  { %1222 = vtanh.f32 %v482_v9  ;;  %v997_v12 = vmul.f32 -1.442695, %v482_v9 }
 0x968   :  { %1224 = vpow2.f32 %v997_v12 }
 0x970   :  { %v1223_v11 = vpop.eup %1222 }
 0x971   :  { %492 = vrot.lane.b32.xlu1 %v1223_v11, %s1437_s3 }
 0x972   :  { %v1225_v13 = vpop.eup %1224 }
 0x973   :  { %v486_v14 = vadd.f32 1.0, %v1225_v13 }
 0x975   :  { %1226 = vrcp.f32 %v486_v14 }
 0x97f   :  { %v1227_v15 = vpop.eup %1226 }
 0x980   :  { %v490_v18 = vmul.f32 %v1227_v15, %v395_v62 }
 0x9e3   :  { %v493_v16 = vpop.permute.xlu1 %492 }
 0x9e4   :  { %v495_v17 = vmul.f32 %v1227_v15, %v493_v16 }
 0x9e6   :  { %497 = vrot.lane.b32.xlu0 %v495_v17, %s1430_s1 }
 0xa58   :  { %v498_v19 = vpop.permute.xlu0 %497 }
 0xa59   :  { %v500_v20 = vadd.f32 %v498_v19, %v490_v18 }
 0xa5b   :  { %1228 = vtanh.f32 %v500_v20 }
 0xa65   :  { %v1229_v21 = vpop.eup %1228 }
 0xa66   :  { %503 = vrot.lane.b32.xlu1 %v1229_v21, %s1437_s3 }
 0xad8   :  { %v504_v22 = vpop.permute.xlu1 %503 }
 0xad9   :  { %v506_v23 = vmul.f32 %v1227_v15, %v504_v22  ;;  %v829_v15 = vld [vmem:[#allocation4 + $0xe] sm:$0x3] }
 0xadb   :  { %508 = vrot.lane.b32.xlu0 %v506_v23, %s1430_s1 }
 0xb4d   :  { %v509_v24 = vpop.permute.xlu0 %508 }
 0xb4e   :  { %512 = vst.msk [vmem:[#allocation12 + $0x6] sm:$0x3] %vm78_vm1, %v509_v24  ;;  %1099 = vmatmul.mubr.msk.f32.vlgmr.msra.gmra.mrb[4].mxu0 %vm89_vm2, %v509_v24 }
 0xb4f   :  { %1172 = vmatpush3.bf16.msra.mxu0 %v1534_v5  ;;  %1120 = vmatprep.mubr.msk.f32.mxu0 %vm1435_vm0, %v1436_v1 }
 0xb50   :  { %1173 = vmatprep.subr.bf16.mxu0 %v1434_v0 }
 0xb53   :  { %1175 = vmatpush3.bf16.msra.mxu0 %v1538_v8 }
 0xc21   :  { %v583_v26 = vpop.f32.mrb[4].mxu0 }
 0xc22   :  { %v587_v27 = vadd.f32 %v583_v26, %v514_v25  ;;  %v1100_v28 = vpop.f32.mrb[5].mxu0 }
 0xc24   :  { %1230 = vtanh.f32 %v587_v27  ;;  %v999_v30 = vmul.f32 -1.442695, %v587_v27 }
 0xc26   :  { %1232 = vpow2.f32 %v999_v30 }
 0xc2e   :  { %v1231_v29 = vpop.eup %1230 }
 0xc2f   :  { %597 = vrot.lane.b32.xlu1 %v1231_v29, %s1437_s3 }
 0xc30   :  { %v1233_v31 = vpop.eup %1232 }
 0xc31   :  { %v591_v32 = vadd.f32 1.0, %v1233_v31 }
 0xc33   :  { %1234 = vrcp.f32 %v591_v32 }
 0xc3d   :  { %v1235_v33 = vpop.eup %1234 }
 0xc3e   :  { %v595_v36 = vmul.f32 %v1235_v33, %v500_v20 }
 0xca1   :  { %v598_v34 = vpop.permute.xlu1 %597 }
 0xca2   :  { %v600_v35 = vmul.f32 %v1235_v33, %v598_v34 }
 0xca4   :  { %602 = vrot.lane.b32.xlu0 %v600_v35, %s1430_s1 }
 0xd16   :  { %v603_v37 = vpop.permute.xlu0 %602 }
 0xd17   :  { %v605_v38 = vadd.f32 %v603_v37, %v595_v36 }
 0xd19   :  { %1236 = vtanh.f32 %v605_v38 }
 0xd23   :  { %v1237_v39 = vpop.eup %1236 }
 0xd24   :  { %608 = vrot.lane.b32.xlu1 %v1237_v39, %s1437_s3 }
 0xd96   :  { %v609_v40 = vpop.permute.xlu1 %608 }
 0xd97   :  { %v611_v41 = vmul.f32 %v1235_v33, %v609_v40 }
 0xd99   :  { %613 = vrot.lane.b32.xlu0 %v611_v41, %s1430_s1 }
 0xe0b   :  { %v614_v42 = vpop.permute.xlu0 %613 }
 0xe0c   :  { %617 = vst.msk [vmem:[#allocation12 + $0x8] sm:$0x3] %vm78_vm1, %v614_v42  ;;  %1110 = vmatmul.mubr.msk.f32.vlgmr.msra.gmra.mrb[4].mxu1 %vm89_vm2, %v614_v42 }
 0xe0d   :  { %1178 = vmatpush3.bf16.msra.mxu1 %v1534_v5  ;;  %1131 = vmatprep.mubr.msk.f32.mxu1 %vm1435_vm0, %v1436_v1 }
 0xe0e   :  { %1179 = vmatprep.subr.bf16.mxu1 %v1434_v0 }
 0xe11   :  { %1181 = vmatpush3.bf16.msra.mxu1 %v1538_v8 }
 0xedf   :  { %v688_v44 = vpop.f32.mrb[4].mxu1 }
 0xee0   :  { %v692_v45 = vadd.f32 %v688_v44, %v619_v43  ;;  %v1111_v46 = vpop.f32.mrb[5].mxu1 }
 0xee2   :  { %1238 = vtanh.f32 %v692_v45  ;;  %v1001_v48 = vmul.f32 -1.442695, %v692_v45 }
 0xee4   :  { %1240 = vpow2.f32 %v1001_v48 }
 0xeec   :  { %v1239_v47 = vpop.eup %1238 }
 0xeed   :  { %702 = vrot.lane.b32.xlu1 %v1239_v47, %s1437_s3 }
 0xeee   :  { %v1241_v49 = vpop.eup %1240 }
 0xeef   :  { %v696_v50 = vadd.f32 1.0, %v1241_v49 }
 0xef1   :  { %1242 = vrcp.f32 %v696_v50 }
 0xefb   :  { %v1243_v5 = vpop.eup %1242 }
 0xefc   :  { %v700_v0 = vmul.f32 %v1243_v5, %v605_v38 }
 0xf5f   :  { %v703_v51 = vpop.permute.xlu1 %702 }
 0xf60   :  { %v705_v1 = vmul.f32 %v1243_v5, %v703_v51 }
 0xf62   :  { %707 = vrot.lane.b32.xlu0 %v705_v1, %s1430_s1 }
 0xfd4   :  { %v708_v8 = vpop.permute.xlu0 %707 }
 0xfd5   :  { %v710_v52 = vadd.f32 %v708_v8, %v700_v0 }
 0xfd7   :  { %1244 = vtanh.f32 %v710_v52 }
 0xfe1   :  { %v1245_v53 = vpop.eup %1244 }
 0xfe2   :  { %713 = vrot.lane.b32.xlu1 %v1245_v53, %s1437_s3 }
0x1054   :  { %v714_v54 = vpop.permute.xlu1 %713 }
0x1055   :  { %v716_v55 = vmul.f32 %v1243_v5, %v714_v54 }
0x1057   :  { %718 = vrot.lane.b32.xlu0 %v716_v55, %s1430_s1 }
0x10c9   :  { %v719_v56 = vpop.permute.xlu0 %718 }
0x10ca   :  { %722 = vst.msk [vmem:[#allocation12 + $0xa] sm:$0x3] %vm78_vm1, %v719_v56  ;;  %1121 = vmatmul.mubr.msk.f32.vlgmr.msra.gmra.mrb[6].mxu0 %vm89_vm2, %v719_v56 }
0x119d   :  { %v793_v58 = vpop.f32.mrb[6].mxu0 }
0x119e   :  { %v797_v59 = vadd.f32 %v793_v58, %v724_v57  ;;  %v1122_v60 = vpop.f32.mrb[7].mxu0 }
0x11a0   :  { %1246 = vtanh.f32 %v797_v59  ;;  %v1003_v62 = vmul.f32 -1.442695, %v797_v59 }
0x11a2   :  { %1248 = vpow2.f32 %v1003_v62 }
0x11aa   :  { %v1247_v61 = vpop.eup %1246 }
0x11ab   :  { %807 = vrot.lane.b32.xlu1 %v1247_v61, %s1437_s3 }
0x11ac   :  { %v1249_v63 = vpop.eup %1248 }
0x11ad   :  { %v801_v2 = vadd.f32 1.0, %v1249_v63 }
0x11af   :  { %1250 = vrcp.f32 %v801_v2 }
0x11b9   :  { %v1251_v3 = vpop.eup %1250 }
0x11ba   :  { %v805_v7 = vmul.f32 %v1251_v3, %v710_v52 }
0x121d   :  { %v808_v4 = vpop.permute.xlu1 %807 }
0x121e   :  { %v810_v6 = vmul.f32 %v1251_v3, %v808_v4 }
0x1220   :  { %812 = vrot.lane.b32.xlu0 %v810_v6, %s1430_s1 }
0x1292   :  { %v813_v9 = vpop.permute.xlu0 %812 }
0x1293   :  { %v815_v10 = vadd.f32 %v813_v9, %v805_v7 }
0x1295   :  { %1252 = vtanh.f32 %v815_v10 }
0x129f   :  { %v1253_v11 = vpop.eup %1252 }
0x12a0   :  { %818 = vrot.lane.b32.xlu1 %v1253_v11, %s1437_s3 }
0x1312   :  { %v819_v12 = vpop.permute.xlu1 %818 }
0x1313   :  { %v821_v13 = vmul.f32 %v1251_v3, %v819_v12 }
0x1315   :  { %823 = vrot.lane.b32.xlu0 %v821_v13, %s1430_s1 }
0x1387   :  { %v824_v14 = vpop.permute.xlu0 %823 }
0x1388   :  { %827 = vst.msk [vmem:[#allocation12 + $0xc] sm:$0x3] %vm78_vm1, %v824_v14  ;;  %1132 = vmatmul.mubr.msk.f32.vlgmr.msra.gmra.mrb[6].mxu1 %vm89_vm2, %v824_v14 }
0x145b   :  { %v898_v16 = vpop.f32.mrb[6].mxu1 }
0x145c   :  { %v902_v17 = vadd.f32 %v898_v16, %v829_v15  ;;  %v1133_v18 = vpop.f32.mrb[7].mxu1 }
0x145e   :  { %1254 = vtanh.f32 %v902_v17  ;;  %v1005_v20 = vmul.f32 -1.442695, %v902_v17 }
0x1460   :  { %1256 = vpow2.f32 %v1005_v20 }
0x1468   :  { %v1255_v19 = vpop.eup %1254 }
0x1469   :  { %912 = vrot.lane.b32.xlu1 %v1255_v19, %s1437_s3 }
0x146a   :  { %v1257_v21 = vpop.eup %1256 }
0x146b   :  { %v906_v22 = vadd.f32 1.0, %v1257_v21 }
0x146d   :  { %1258 = vrcp.f32 %v906_v22 }
0x1477   :  { %v1259_v23 = vpop.eup %1258 }
0x1478   :  { %v910_v26 = vmul.f32 %v1259_v23, %v815_v10 }
0x14db   :  { %v913_v24 = vpop.permute.xlu1 %912 }
0x14dc   :  { %v915_v25 = vmul.f32 %v1259_v23, %v913_v24 }
0x14de   :  { %917 = vrot.lane.b32.xlu0 %v915_v25, %s1430_s1 }
0x1550   :  { %v918_v27 = vpop.permute.xlu0 %917 }
0x1551   :  { %v920_v28 = vadd.f32 %v918_v27, %v910_v26 }
0x1553   :  { %1260 = vtanh.f32 %v920_v28 }
0x155d   :  { %v1261_v29 = vpop.eup %1260 }
0x155e   :  { %923 = vrot.lane.b32.xlu1 %v1261_v29, %s1437_s3 }
0x1562   :  { %935 = vrot.lane.b32.xlu1 %v920_v28, %s1438_s23 }
0x15d0   :  { %v924_v30 = vpop.permute.xlu1 %923 }
0x15d1   :  { %v926_v31 = vmul.f32 %v1259_v23, %v924_v30 }
0x15d3   :  { %928 = vrot.lane.b32.xlu0 %v926_v31, %s1430_s1 }
0x15d4   :  { %v936_v32 = vpop.permute.xlu1 %935 }
0x15d5   :  { %938 = vst.msk [vmem:[#allocation3] sm:$0x3] %vm78_vm1, %v936_v32  ;;  %943 = vst.msk [vmem:[#allocation15] sm:$0x3] %vm78_vm1, %v936_v32 }
0x1645   :  { %v929_v33 = vpop.permute.xlu0 %928 }
0x1646   :  { %932 = vst.msk [vmem:[#allocation12 + $0xe] sm:$0x3] %vm78_vm1, %v929_v33  ;;  %933 = vst.msk [vmem:[#allocation2] sm:$0x3] %vm78_vm1, %v929_v33 }
0x1647   :  { %942 = vst.msk [vmem:[#allocation13] sm:$0x3] %vm78_vm1, %v929_v33 }
0x1648   :  { %1361 = shalt.err (!%p1358_p8)
}
0x1649   :  { %s1362_s9 = scalar_lea.hbm %s1693_s5, 32 }
0x164a   :  { %p1363_p9 = scmp.ne.s32.totalorder %s1693_s5, %s1362_s9  ;;  %p1366_p10 = scmp.lt.u32.totalorder %s1362_s9, %s1693_s5 }
0x164c   :  { %p1368_p11 = pnand %p1366_p10, %p1363_p9 }
0x164e   :  { %1371 = shalt.err (!%p1368_p11)
}
0x164f   :  { %965 = dma.vmem_to_hbm [thread:$0]  %s963_s25, 32, %s1693_s5, [#allocation14]  }
0x1650   :  { %s1372_s15 = scalar_lea.vmem %s1632_s27, 256  ;;  %p1377_p13 = scmp.lt.s32.totalorder %s1632_s27, %s1632_s27 }
0x1651   :  { %p1373_p12 = scmp.ne.s32.totalorder %s1632_s27, %s1372_s15  ;;  %p1378_p0 = scmp.lt.s32.totalorder %s1372_s15, %s1372_s15 }
0x1653   :  { %p1379_p1 = por %p1378_p0, %p1377_p13 }
0x1655   :  { %p1380_p2 = pnand %p1379_p1, %p1373_p12 }
0x1657   :  { %1383 = shalt.err (!%p1380_p2)
}
0x1658   :  { %s1384_s18 = scalar_lea.hbm %s1692_s4, 256 }
0x1659   :  { %p1385_p3 = scmp.ne.s32.totalorder %s1692_s4, %s1384_s18  ;;  %p1388_p4 = scmp.lt.u32.totalorder %s1384_s18, %s1692_s4 }
0x165b   :  { %p1390_p5 = pnand %p1388_p4, %p1385_p3 }
0x165d   :  { %1393 = shalt.err (!%p1390_p5)
}
0x165e   :  { %955 = dma.vmem_to_hbm [thread:$0]  %s1632_s27, 256, %s1692_s4, [#allocation6], %s1430_s1, %s1430_s1, %s1431_s21  }
0x165f   :  { %s1394_s23 = scalar_lea.vmem %s1637_s29, 32  ;;  %p1399_p7 = scmp.lt.s32.totalorder %s1637_s29, %s1637_s29 }
0x1660   :  { %p1395_p6 = scmp.ne.s32.totalorder %s1637_s29, %s1394_s23  ;;  %p1400_p8 = scmp.lt.s32.totalorder %s1394_s23, %s1394_s23 }
0x1662   :  { %p1401_p9 = por %p1400_p8, %p1399_p7 }
0x1664   :  { %p1402_p10 = pnand %p1401_p9, %p1395_p6 }
0x1666   :  { %1405 = shalt.err (!%p1402_p10)
}
0x1667   :  { %s1406_s26 = scalar_lea.hbm %s1694_s6, 32 }
0x1668   :  { %p1407_p11 = scmp.ne.s32.totalorder %s1694_s6, %s1406_s26  ;;  %p1410_p12 = scmp.lt.u32.totalorder %s1406_s26, %s1694_s6 }
0x166a   :  { %p1412_p13 = pnand %p1410_p12, %p1407_p11 }
0x166c   :  { %1415 = shalt.err (!%p1412_p13)
}
0x166d   :  { %975 = dma.vmem_to_hbm [thread:$0]  %s1637_s29, 32, %s1694_s6, [#allocation14]  }
0x166e   :  { %1422 = dma.done.wait [#allocation6], 256  }
0x166f   :  { %1423 = vsyncadd [#allocation6], 4294967040 }
0x1670   :  { %1424 = dma.done.wait [#allocation14], 64  }
0x1671   :  { %1425 = vsyncadd [#allocation14], 4294967232 }
0x1672   :  { %985 = vsyncpa [#allocation5], 1 }
0x1673   :  { %986 = vsyncpa [#allocation8], 1 }
0x1674   :  { %987 = vsyncpa [#allocation11], 1 }
0x1675   :  { %988 = vsyncpa [#allocation6], 1 }
0x1676   :  { %989 = vsyncpa [#allocation14], 1 }

</bundles_post_ra>
